<compile_context>
chip_gen: v7x
topology: tpu7x:2x2x1
jax: 0.10.0
libtpu: 0.0.40
codegen_flags: <defaults>
</compile_context>

<pallas_src>
import functools

import jax
import jax.numpy as jnp
from jax import lax
from jax.experimental import pallas as pl
from jax.experimental.pallas import tpu as pltpu

_EPS = 1e-12  # matches torch.nn.functional.normalize default eps

# Abramowitz & Stegun 4.4.46: arcsin(t) = pi/2 - sqrt(1-t) * P(t), t in [0, 1],
# absolute error <= 2e-8 (far below f32 resolution for values ~O(1)).
_ASIN_COEFFS = (1.5707963050, -0.2145988016, 0.0889789874, -0.0501743046,
                0.0308918810, -0.0170881256, 0.0066700901, -0.0012624911)


def _asin01(t):
    """arcsin(t) for t in [0, 1] using only mul/add/sqrt (Mosaic-safe)."""
    p = jnp.float32(_ASIN_COEFFS[-1])
    for coef in _ASIN_COEFFS[-2::-1]:
        p = p * t + jnp.float32(coef)
    return jnp.float32(jnp.pi / 2) - jnp.sqrt(jnp.maximum(1.0 - t, 0.0)) * p


def _round_up(a, b):
    return pl.cdiv(a, b) * b


def _prompt_tile_kernel(x_ref, en_ref, ne2_ref, o_ref, *, n_rows, n_cols):
    """Partial sums of 2*arcsin(||normalize(x) - en|| / 2)^2 for one row tile.

    x_ref:   (tn, D)      raw input rows (f32)
    en_ref:  (m_pad, D)   pre-normalized embed rows (resident, f32 or bf16)
    ne2_ref: (1, m_pad)   squared norms of en rows (1 for real rows, 0 padded)
    o_ref:   (8, m_pad)   per-tile partial sums (only sublane 0 is meaningful)
    """
    i = pl.program_id(0)
    tn = x_ref.shape[0]
    m_pad = en_ref.shape[0]

    x = x_ref[...]                                        # (tn, D) f32
    en = en_ref[...]                                      # (m_pad, D)
    ne2 = ne2_ref[...]                                    # (1, m_pad)

    eps2 = jnp.float32(_EPS * _EPS)
    sx = jnp.sum(x * x, axis=-1, keepdims=True)           # (tn, 1)
    x_inv = lax.rsqrt(jnp.maximum(sx, eps2))               # 1/max(||x||, eps)  (EUP)
    nx2 = sx * (x_inv * x_inv)                             # ||normalize(x)||^2 (0 for zero rows)

    # <x, en> via a single MXU matmul; x inverse norms are applied to the
    # small (tn, m_pad) result instead of the (tn, D) operand.
    c = lax.dot_general(x.astype(en.dtype), en,
                        dimension_numbers=(((1,), (1,)), ((), ())),
                        preferred_element_type=jnp.float32)   # (tn, m_pad)
    c = c * x_inv

    # Squared chordal distance, clamped into [0, 4] for fp safety.
    d2 = jnp.clip(nx2 + ne2 - 2.0 * c, 0.0, 4.0)
    t = 0.5 * jnp.sqrt(d2)                                  # = ||xn - en|| / 2 in [0, 1]
    a = _asin01(t)
    dist = 2.0 * a * a                                      # 2 * arcsin(d/2)^2

    # Mask padded rows / columns so they contribute 0 to the sum.
    row = lax.broadcasted_iota(jnp.int32, dist.shape, 0) + i * tn
    col = lax.broadcasted_iota(jnp.int32, dist.shape, 1)
    dist = jnp.where((row < n_rows) & (col < n_cols), dist, 0.0)

    # Per-tile partial sums; keep the store fully (8, 128)-aligned by placing
    # the (1, m_pad) reduction in sublane 0 and zeros elsewhere.
    tile_sum = jnp.sum(dist, axis=0, keepdims=True)         # (1, m_pad) XLU reduce
    sub = lax.broadcasted_iota(jnp.int32, (8, m_pad), 0)
    o_ref[...] = jnp.where(sub == 0, tile_sum, jnp.float32(0.0))


def prompt_dist_sum(x, embed, *, block_n=1024, use_bf16=False):
    """Sum over all (n, m) pairs of 2*arcsin(||xn - en||/2)^2 (unweighted)."""
    x = jnp.asarray(x, jnp.float32)
    embed = jnp.asarray(embed, jnp.float32)
    n, feat = x.shape
    m, feat2 = embed.shape
    assert feat == feat2, "feature dims must match"

    eps2 = jnp.float32(_EPS * _EPS)

    # Grid-invariant embed normalization, hoisted out of the kernel.
    se = jnp.sum(embed * embed, axis=-1, keepdims=True)      # (m, 1)
    e_inv = lax.rsqrt(jnp.maximum(se, eps2))
    en = embed * e_inv                                       # normalized rows
    ne2 = (se * e_inv * e_inv).reshape(1, m)                 # ||en_row||^2 (0 for zero rows)

    # Lane-dense padding of the embed side to a multiple of 128.
    m_pad = _round_up(max(m, 1), 128)
    if m_pad != m:
        en = jnp.pad(en, ((0, m_pad - m), (0, 0)))
        ne2 = jnp.pad(ne2, ((0, 0), (0, m_pad - m)))

    # Sublane-aligned row tile; cap it so the parallel grid has >= 2 steps
    # whenever possible (keeps both v7x TensorCores busy; per-step overhead
    # ~0.35 us is negligible on single-TC v5e/v6e).
    tn = min(block_n, _round_up(n, 8))
    if n > 8:
        tn = min(tn, _round_up(pl.cdiv(n, 2), 8))
    tn = max(tn, 8)
    n_pad = _round_up(n, tn)
    if n_pad != n:
        x = jnp.pad(x, ((0, n_pad - n), (0, 0)))
    grid_n = n_pad // tn

    if use_bf16:
        # Reduced-precision MXU path (f32 accumulation); ~1e-3-level cosine
        # error, so self-tests using it must relax the tolerance.
        en = en.astype(jnp.bfloat16)

    kernel = functools.partial(_prompt_tile_kernel, n_rows=n, n_cols=m)
    partial_sums = pl.pallas_call(
        kernel,
        out_shape=jax.ShapeDtypeStruct((8 * grid_n, m_pad), jnp.float32),
        grid_spec=pltpu.PrefetchScalarGridSpec(
            num_scalar_prefetch=0,
            grid=(grid_n,),
            in_specs=[
                pl.BlockSpec((tn, feat), lambda i: (i, 0)),      # x tiles, pipelined
                pl.BlockSpec((m_pad, feat), lambda i: (0, 0)),   # embed, resident
                pl.BlockSpec((1, m_pad), lambda i: (0, 0)),      # embed sq-norms, resident
            ],
            out_specs=pl.BlockSpec((8, m_pad), lambda i: (i, 0)),
        ),
        compiler_params=pltpu.CompilerParams(
            dimension_semantics=("parallel",)),
    )(x, en, ne2)

    return jnp.sum(partial_sums)


def prompt_forward(x, embed, weight=1.0, stop=float("-inf"), *,
                   block_n=1024, use_bf16=False):
    """Forward pass of Prompt: scalar loss value."""
    del stop  # TODO(synk): `stop` only affects gradients via ReplaceGrad; forward value unchanged.
    w = jnp.asarray(weight, jnp.float32)
    n, m = x.shape[0], embed.shape[0]
    total = prompt_dist_sum(x, embed, block_n=block_n, use_bf16=use_bf16)
    mean = total / jnp.float32(n * m)
    return jnp.abs(w) * (jnp.sign(w) * mean)


def prompt_forward_ref(x, embed, weight=1.0):
    """Pure-JAX reference (difference-norm formulation) for verification."""
    eps = _EPS
    x = jnp.asarray(x, jnp.float32)
    embed = jnp.asarray(embed, jnp.float32)
    xn = x / jnp.maximum(jnp.linalg.norm(x, axis=-1, keepdims=True), eps)
    en = embed / jnp.maximum(jnp.linalg.norm(embed, axis=-1, keepdims=True), eps)
    d = jnp.linalg.norm(xn[:, None, :] - en[None, :, :], axis=-1)
    w = jnp.asarray(weight, jnp.float32)
    dists = 2.0 * jnp.arcsin(d / 2.0) ** 2 * jnp.sign(w)
    return jnp.abs(w) * jnp.mean(dists)


if __name__ == "__main__":
    key = jax.random.PRNGKey(0)
    k1, k2, k3 = jax.random.split(key, 3)

    # Small CLIP-like shapes: N inputs, M prompt embeddings, feature dim D.
    N, M, D = 8, 4, 512
    x = jax.random.normal(k1, (N, D), dtype=jnp.float32)
    embed = jax.random.normal(k2, (M, D), dtype=jnp.float32)
    weight = 1.0
    stop = float("-inf")

    out = jax.block_until_ready(prompt_forward(x, embed, weight, stop))
    ref = jax.block_until_ready(prompt_forward_ref(x, embed, weight))
    assert out.shape == (), f"expected scalar output, got {out.shape}"
    assert abs(float(out) - float(ref)) < 1e-4, (float(out), float(ref))

    # Multi-tile / padding path (grid > 1, N not a multiple of the tile,
    # padded rows in the last tile masked inside the kernel).
    N2 = 300
    x2 = jax.random.normal(k3, (N2, D), dtype=jnp.float32)
    out2 = jax.block_until_ready(prompt_forward(x2, embed, weight, stop, block_n=128))
    ref2 = jax.block_until_ready(prompt_forward_ref(x2, embed, weight))
    assert abs(float(out2) - float(ref2)) < 1e-4, (float(out2), float(ref2))

    # All-zero input row: torch F.normalize keeps it a zero vector.
    x_zero = x.at[3].set(0.0)
    out3 = jax.block_until_ready(prompt_forward(x_zero, embed, weight, stop))
    ref3 = jax.block_until_ready(prompt_forward_ref(x_zero, embed, weight))
    assert abs(float(out3) - float(ref3)) < 1e-4, (float(out3), float(ref3))

    # Negative weight flips the sign through sign(w)/|w|.
    out4 = jax.block_until_ready(prompt_forward(x, embed, -0.5, stop))
    ref4 = jax.block_until_ready(prompt_forward_ref(x, embed, -0.5))
    assert abs(float(out4) - float(ref4)) < 1e-4, (float(out4), float(ref4))

    # Optional reduced-precision MXU path (looser tolerance by design).
    out5 = jax.block_until_ready(prompt_forward(x, embed, weight, stop, use_bf16=True))
    assert abs(float(out5) - float(ref)) < 5e-3, (float(out5), float(ref))

    print("KERNEL_OK")
</pallas_src>

<mosaic_0001>
module attributes {stable_mosaic.version = 11 : i64} {
  func.func @_prompt_tile_kernel(%arg0: i32, %arg1: memref<8x512xf32, #tpu.memory_space<vmem>>, %arg2: memref<128x512xf32, #tpu.memory_space<vmem>>, %arg3: memref<1x128xf32, #tpu.memory_space<vmem>>, %arg4: memref<8x128xf32, #tpu.memory_space<vmem>>) attributes {dimension_semantics = [#tpu.dimension_semantics<parallel>], iteration_bounds = array<i64: 1>, scalar_prefetch = 0 : i64, scratch_operands = 0 : i64, tpu.core_type = #tpu.core_type<tc>, window_params = [{transform_indices = @transform_0, window_bounds = array<i64: 8, 512>}, {pipeline_mode = #tpu.pipeline_mode<synchronous>, transform_indices = @transform_1, window_bounds = array<i64: 128, 512>}, {pipeline_mode = #tpu.pipeline_mode<synchronous>, transform_indices = @transform_2, window_bounds = array<i64: 1, 128>}, {transform_indices = @transform_3, window_bounds = array<i64: 8, 128>}]} {
    %c0 = arith.constant 0 : index
    %c0_0 = arith.constant 0 : index
    %0 = vector.load %arg1[%c0, %c0_0] : memref<8x512xf32, #tpu.memory_space<vmem>>, vector<8x512xf32>
    %c0_1 = arith.constant 0 : index
    %c0_2 = arith.constant 0 : index
    %1 = vector.load %arg2[%c0_1, %c0_2] : memref<128x512xf32, #tpu.memory_space<vmem>>, vector<128x512xf32>
    %c0_3 = arith.constant 0 : index
    %c0_4 = arith.constant 0 : index
    %2 = vector.load %arg3[%c0_3, %c0_4] : memref<1x128xf32, #tpu.memory_space<vmem>>, vector<1x128xf32>
    %3 = arith.mulf %0, %0 : vector<8x512xf32>
    %cst = arith.constant dense<0.000000e+00> : vector<8xf32>
    %4 = vector.multi_reduction <add>, %3, %cst [1] : vector<8x512xf32> to vector<8xf32>
    %5 = vector.shape_cast %4 : vector<8xf32> to vector<8x1xf32>
    %cst_5 = arith.constant 1.000000e-24 : f32
    %6 = vector.broadcast %cst_5 : f32 to vector<8x1xf32>
    %7 = arith.maximumf %5, %6 : vector<8x1xf32>
    %8 = math.rsqrt %7 : vector<8x1xf32>
    %9 = arith.mulf %8, %8 : vector<8x1xf32>
    %10 = arith.mulf %5, %9 : vector<8x1xf32>
    %cst_6 = arith.constant dense<0.000000e+00> : vector<8x128xf32>
    %11 = tpu.matmul %0, %1, %cst_6 {dimension_numbers = #tpu.dot_dimension_numbers<[1], [1], [0], [0], [0, 0, 1, 0], [], []>} : vector<8x512xf32>, vector<128x512xf32>, vector<8x128xf32> -> vector<8x128xf32>
    %12 = vector.broadcast %8 : vector<8x1xf32> to vector<8x128xf32>
    %13 = arith.mulf %11, %12 : vector<8x128xf32>
    %14 = vector.broadcast %10 : vector<8x1xf32> to vector<8x128xf32>
    %15 = vector.broadcast %2 : vector<1x128xf32> to vector<8x128xf32>
    %16 = arith.addf %14, %15 : vector<8x128xf32>
    %cst_7 = arith.constant 2.000000e+00 : f32
    %17 = vector.broadcast %cst_7 : f32 to vector<8x128xf32>
    %18 = arith.mulf %17, %13 : vector<8x128xf32>
    %19 = arith.subf %16, %18 : vector<8x128xf32>
    %cst_8 = arith.constant 0.000000e+00 : f32
    %cst_9 = arith.constant 4.000000e+00 : f32
    %20 = vector.broadcast %cst_8 : f32 to vector<8x128xf32>
    %21 = arith.maximumf %20, %19 : vector<8x128xf32>
    %22 = vector.broadcast %cst_9 : f32 to vector<8x128xf32>
    %23 = arith.minimumf %22, %21 : vector<8x128xf32>
    %24 = math.sqrt %23 : vector<8x128xf32>
    %cst_10 = arith.constant 5.000000e-01 : f32
    %25 = vector.broadcast %cst_10 : f32 to vector<8x128xf32>
    %26 = arith.mulf %25, %24 : vector<8x128xf32>
    %cst_11 = arith.constant -0.0012624911 : f32
    %27 = vector.broadcast %cst_11 : f32 to vector<8x128xf32>
    %28 = arith.mulf %27, %26 : vector<8x128xf32>
    %cst_12 = arith.constant 6.670090e-03 : f32
    %29 = vector.broadcast %cst_12 : f32 to vector<8x128xf32>
    %30 = arith.addf %28, %29 : vector<8x128xf32>
    %31 = arith.mulf %30, %26 : vector<8x128xf32>
    %cst_13 = arith.constant -0.0170881264 : f32
    %32 = vector.broadcast %cst_13 : f32 to vector<8x128xf32>
    %33 = arith.addf %31, %32 : vector<8x128xf32>
    %34 = arith.mulf %33, %26 : vector<8x128xf32>
    %cst_14 = arith.constant 0.0308918804 : f32
    %35 = vector.broadcast %cst_14 : f32 to vector<8x128xf32>
    %36 = arith.addf %34, %35 : vector<8x128xf32>
    %37 = arith.mulf %36, %26 : vector<8x128xf32>
    %cst_15 = arith.constant -0.0501743034 : f32
    %38 = vector.broadcast %cst_15 : f32 to vector<8x128xf32>
    %39 = arith.addf %37, %38 : vector<8x128xf32>
    %40 = arith.mulf %39, %26 : vector<8x128xf32>
    %cst_16 = arith.constant 0.0889789909 : f32
    %41 = vector.broadcast %cst_16 : f32 to vector<8x128xf32>
    %42 = arith.addf %40, %41 : vector<8x128xf32>
    %43 = arith.mulf %42, %26 : vector<8x128xf32>
    %cst_17 = arith.constant -0.214598805 : f32
    %44 = vector.broadcast %cst_17 : f32 to vector<8x128xf32>
    %45 = arith.addf %43, %44 : vector<8x128xf32>
    %46 = arith.mulf %45, %26 : vector<8x128xf32>
    %cst_18 = arith.constant 1.57079625 : f32
    %47 = vector.broadcast %cst_18 : f32 to vector<8x128xf32>
    %48 = arith.addf %46, %47 : vector<8x128xf32>
    %cst_19 = arith.constant 1.000000e+00 : f32
    %49 = vector.broadcast %cst_19 : f32 to vector<8x128xf32>
    %50 = arith.subf %49, %26 : vector<8x128xf32>
    %cst_20 = arith.constant 0.000000e+00 : f32
    %51 = vector.broadcast %cst_20 : f32 to vector<8x128xf32>
    %52 = arith.maximumf %50, %51 : vector<8x128xf32>
    %53 = math.sqrt %52 : vector<8x128xf32>
    %54 = arith.mulf %53, %48 : vector<8x128xf32>
    %cst_21 = arith.constant 1.57079637 : f32
    %55 = vector.broadcast %cst_21 : f32 to vector<8x128xf32>
    %56 = arith.subf %55, %54 : vector<8x128xf32>
    %cst_22 = arith.constant 2.000000e+00 : f32
    %57 = vector.broadcast %cst_22 : f32 to vector<8x128xf32>
    %58 = arith.mulf %57, %56 : vector<8x128xf32>
    %59 = arith.mulf %58, %56 : vector<8x128xf32>
    %60 = tpu.iota {dimensions = array<i32: 0>} : vector<8x128xi32>
    %c8_i32 = arith.constant 8 : i32
    %61 = arith.muli %arg0, %c8_i32 : i32
    %62 = vector.broadcast %61 : i32 to vector<8x128xi32>
    %63 = arith.addi %60, %62 : vector<8x128xi32>
    %64 = tpu.iota {dimensions = array<i32: 1>} : vector<8x128xi32>
    %c8_i32_23 = arith.constant 8 : i32
    %65 = vector.broadcast %c8_i32_23 : i32 to vector<8x128xi32>
    %66 = arith.cmpi slt, %63, %65 : vector<8x128xi32>
    %c4_i32 = arith.constant 4 : i32
    %67 = vector.broadcast %c4_i32 : i32 to vector<8x128xi32>
    %68 = arith.cmpi slt, %64, %67 : vector<8x128xi32>
    %69 = arith.andi %66, %68 : vector<8x128xi1>
    %cst_24 = arith.constant 0.000000e+00 : f32
    %70 = vector.broadcast %cst_24 : f32 to vector<8x128xf32>
    %71 = arith.select %69, %59, %70 : vector<8x128xi1>, vector<8x128xf32>
    %cst_25 = arith.constant dense<0.000000e+00> : vector<128xf32>
    %72 = vector.multi_reduction <add>, %71, %cst_25 [0] : vector<8x128xf32> to vector<128xf32>
    %73 = vector.shape_cast %72 : vector<128xf32> to vector<1x128xf32>
    %74 = tpu.iota {dimensions = array<i32: 0>} : vector<8x128xi32>
    %c0_i32 = arith.constant 0 : i32
    %75 = vector.broadcast %c0_i32 : i32 to vector<8x128xi32>
    %76 = arith.cmpi eq, %74, %75 : vector<8x128xi32>
    %cst_26 = arith.constant 0.000000e+00 : f32
    %77 = vector.shape_cast %73 : vector<1x128xf32> to vector<1x128xf32>
    %78 = vector.broadcast %77 : vector<1x128xf32> to vector<8x128xf32>
    %79 = vector.broadcast %cst_26 : f32 to vector<8x128xf32>
    %80 = arith.select %76, %78, %79 : vector<8x128xi1>, vector<8x128xf32>
    %c0_27 = arith.constant 0 : index
    %c0_28 = arith.constant 0 : index
    %81 = vector.load %arg4[%c0_27, %c0_28] : memref<8x128xf32, #tpu.memory_space<vmem>>, vector<8x128xf32>
    tpu.vector_store %arg4[%c0_27, %c0_28], %80 {strides = array<i32>} : memref<8x128xf32, #tpu.memory_space<vmem>>, vector<8x128xf32>,
    return
  }
  func.func @transform_0(%arg0: i32) -> (i32, i32) {
    %c0_i32 = arith.constant 0 : i32
    %c0_i32_0 = arith.constant 0 : i32
    return %arg0, %c0_i32 : i32, i32
  }
  func.func @transform_1(%arg0: i32) -> (i32, i32) {
    %c0_i32 = arith.constant 0 : i32
    %c0_i32_0 = arith.constant 0 : i32
    %c0_i32_1 = arith.constant 0 : i32
    return %c0_i32, %c0_i32_0 : i32, i32
  }
  func.func @transform_2(%arg0: i32) -> (i32, i32) {
    %c0_i32 = arith.constant 0 : i32
    %c0_i32_0 = arith.constant 0 : i32
    %c0_i32_1 = arith.constant 0 : i32
    return %c0_i32, %c0_i32_0 : i32, i32
  }
  func.func @transform_3(%arg0: i32) -> (i32, i32) {
    %c0_i32 = arith.constant 0 : i32
    %c0_i32_0 = arith.constant 0 : i32
    return %arg0, %c0_i32 : i32, i32
  }
}

</mosaic_0001>

<bundles_post_ra>
// kernel: tpu_custom_call.1
= control target key start
LH: loop header
LB: loop body
LE: loop exit
PB: predicated region body
PF: predicated region fallthrough
CT: control target
= control target key end

     0   :  { %8 = vsyncpa [#allocation3], 0  ;;  %s576_s0 = inlined_call_operand.hbm [shape: f32[8,512], index: 0, kind: input, shape index: {}]   ;;  %s577_s1 = inlined_call_operand.hbm [shape: f32[128,512], index: 1, kind: input, shape index: {}]   ;;  %s578_s2 = inlined_call_operand.vmem [shape: f32[1,128], index: 2, kind: input, shape index: {}]   ;;  %s579_s3 = inlined_call_operand.hbm [shape: f32[8,128], index: 3, kind: output, shape index: {}]  }
   0x1   :  { %9 = vsyncpa [#allocation6], 0 }
   0x2   :  { %10 = vsyncpa [#allocation4], 0  ;;  %s495_s12 = smov [#allocation2]   ;;  %s496_s14 = smov [#allocation5]  }
   0x3   :  { %s17_s13 = sshll.u32 %s495_s12, 4  ;;  %s26_s15 = sshll.u32 %s496_s14, 4  ;;  %s18_s13 = int_to_ptr.vmem [resolvable:$true] %s17_s13  ;;  %s520_s15 = int_to_ptr.vmem [resolvable:$true] %s26_s15 }
   0x4   :  { %s423_s18 = scalar_lea.hbm %s576_s0, 512 }
   0x5   :  { %p424_p0 = scmp.ne.s32.totalorder %s576_s0, %s423_s18  ;;  %p427_p1 = scmp.lt.u32.totalorder %s423_s18, %s576_s0 }
   0x7   :  { %p429_p2 = pnand %p427_p1, %p424_p0 }
   0x9   :  { %432 = shalt.err (!%p429_p2)
}
   0xa   :  { %s433_s23 = scalar_lea.vmem %s18_s13, 512  ;;  %p438_p4 = scmp.lt.s32.totalorder %s18_s13, %s18_s13 }
   0xb   :  { %p434_p3 = scmp.ne.s32.totalorder %s18_s13, %s433_s23  ;;  %p439_p5 = scmp.lt.s32.totalorder %s433_s23, %s433_s23 }
   0xd   :  { %p440_p6 = por %p439_p5, %p438_p4 }
   0xf   :  { %p441_p7 = pnand %p440_p6, %p434_p3 }
  0x11   :  { %444 = shalt.err (!%p441_p7)
}
  0x12   :  { %20 = dma.hbm_to_vmem [thread:$0]  %s576_s0, 512, %s18_s13, [#allocation3]  }
  0x13   :  { %s445_s28 = scalar_lea.hbm %s577_s1, 8192 }
  0x14   :  { %p446_p8 = scmp.ne.s32.totalorder %s577_s1, %s445_s28  ;;  %p449_p9 = scmp.lt.u32.totalorder %s445_s28, %s577_s1 }
  0x16   :  { %p451_p10 = pnand %p449_p9, %p446_p8 }
  0x18   :  { %454 = shalt.err (!%p451_p10)
}
  0x19   :  { %s455_s6 = scalar_lea.vmem %s520_s15, 8192  ;;  %p460_p12 = scmp.lt.s32.totalorder %s520_s15, %s520_s15 }
  0x1a   :  { %p456_p11 = scmp.ne.s32.totalorder %s520_s15, %s455_s6  ;;  %p461_p13 = scmp.lt.s32.totalorder %s455_s6, %s455_s6 }
  0x1c   :  { %p462_p0 = por %p461_p13, %p460_p12 }
  0x1e   :  { %p463_p1 = pnand %p462_p0, %p456_p11 }
  0x20   :  { %466 = shalt.err (!%p463_p1)
}
  0x21   :  { %s497_s0 = smov 512   ;;  %s498_s7 = smov 32  }
  0x22   :  { %32 = dma.hbm_to_vmem [thread:$0]  %s577_s1, 8192, %s520_s15, [#allocation6], %s497_s0, %s497_s0, %s498_s7  }
  0x23   :  { %489 = dma.done.wait [#allocation3], 512  }
  0x24   :  { %490 = vsyncadd [#allocation3], 4294966784 }
  0x25   :  { %491 = dma.done.wait [#allocation6], 8192  }
  0x26   :  { %492 = vsyncadd [#allocation6], 4294959104  ;;  %v46_v0 = vld [vmem:[#allocation5 + $0x8] sm:$0xff]  ;;  %v48_v2 = vld [vmem:[#allocation5 + $0x18] sm:$0xff] }
  0x27   :  { %v50_v1 = vld [vmem:[#allocation5 + $0x28] sm:$0xff]  ;;  %v52_v4 = vld [vmem:[#allocation5 + $0x38] sm:$0xff]  ;;  %v45_v5 = vld [vmem:[#allocation5] sm:$0xff] }
  0x28   :  { %v347_v3 = vpack.c.bf16 %v50_v1, %v46_v0  ;;  %v49_v6 = vld [vmem:[#allocation5 + $0x20] sm:$0xff]  ;;  %v379_v7 = vpack.c.bf16 %v52_v4, %v48_v2  ;;  %v47_v9 = vld [vmem:[#allocation5 + $0x10] sm:$0xff]  ;;  %v54_v11 = vld [vmem:[#allocation5 + $0x48] sm:$0xff] }
  0x29   :  { %v349_v8 = vpack.c.bf16 %v49_v6, %v45_v5  ;;  %v51_v10 = vld [vmem:[#allocation5 + $0x30] sm:$0xff]  ;;  %v58_v13 = vld [vmem:[#allocation5 + $0x68] sm:$0xff]  ;;  %v56_v14 = vld [vmem:[#allocation5 + $0x58] sm:$0xff] }
  0x2a   :  { %348 = vmatprep.subr.bf16.mxu1 %v347_v3  ;;  %v381_v12 = vpack.c.bf16 %v51_v10, %v47_v9  ;;  %v60_v15 = vld [vmem:[#allocation5 + $0x78] sm:$0xff]  ;;  %380 = vmatprep.subr.bf16.mxu0 %v379_v7  ;;  %v351_v16 = vpack.c.bf16 %v58_v13, %v54_v11  ;;  %v53_v18 = vld [vmem:[#allocation5 + $0x40] sm:$0xff]  ;;  %v55_v20 = vld [vmem:[#allocation5 + $0x50] sm:$0xff] }
  0x2b   :  { %350 = vmatpush1.bf16.xpose.msra.mxu1 %v349_v8  ;;  %v383_v17 = vpack.c.bf16 %v60_v15, %v56_v14  ;;  %v57_v19 = vld [vmem:[#allocation5 + $0x60] sm:$0xff]  ;;  %v59_v21 = vld [vmem:[#allocation5 + $0x70] sm:$0xff]  ;;  %v62_v22 = vld [vmem:[#allocation5 + $0x88] sm:$0xff] }
  0x2c   :  { %382 = vmatpush1.bf16.xpose.msra.mxu0 %v381_v12  ;;  %352 = vmatprep.subr.bf16.mxu1 %v351_v16  ;;  %v66_v23 = vld [vmem:[#allocation5 + $0xa8] sm:$0xff]  ;;  %v64_v24 = vld [vmem:[#allocation5 + $0x98] sm:$0xff]  ;;  %v353_v26 = vpack.c.bf16 %v57_v19, %v53_v18  ;;  %v385_v27 = vpack.c.bf16 %v59_v21, %v55_v20  ;;  %v61_v30 = vld [vmem:[#allocation5 + $0x80] sm:$0xff] }
  0x2d   :  { %384 = vmatprep.subr.bf16.mxu0 %v383_v17  ;;  %v68_v25 = vld [vmem:[#allocation5 + $0xb8] sm:$0xff]  ;;  %v355_v28 = vpack.c.bf16 %v66_v23, %v62_v22  ;;  %v65_v31 = vld [vmem:[#allocation5 + $0xa0] sm:$0xff]  ;;  %v63_v32 = vld [vmem:[#allocation5 + $0x90] sm:$0xff] }
  0x2e   :  { %v387_v29 = vpack.c.bf16 %v68_v25, %v64_v24  ;;  %v67_v33 = vld [vmem:[#allocation5 + $0xb0] sm:$0xff]  ;;  %v70_v34 = vld [vmem:[#allocation5 + $0xc8] sm:$0xff]  ;;  %v72_v36 = vld [vmem:[#allocation5 + $0xd8] sm:$0xff]  ;;  %v357_v38 = vpack.c.bf16 %v65_v31, %v61_v30 }
  0x2f   :  { %v74_v35 = vld [vmem:[#allocation5 + $0xe8] sm:$0xff]  ;;  %v76_v37 = vld [vmem:[#allocation5 + $0xf8] sm:$0xff]  ;;  %v389_v39 = vpack.c.bf16 %v67_v33, %v63_v32  ;;  %v69_v42 = vld [vmem:[#allocation5 + $0xc0] sm:$0xff] }
  0x30   :  { %v359_v40 = vpack.c.bf16 %v74_v35, %v70_v34  ;;  %v391_v41 = vpack.c.bf16 %v76_v37, %v72_v36  ;;  %v73_v43 = vld [vmem:[#allocation5 + $0xe0] sm:$0xff]  ;;  %v71_v44 = vld [vmem:[#allocation5 + $0xd0] sm:$0xff]  ;;  %v78_v46 = vld [vmem:[#allocation5 + $0x108] sm:$0xff] }
  0x31   :  { %v75_v45 = vld [vmem:[#allocation5 + $0xf0] sm:$0xff]  ;;  %v42_v47 = vld [vmem:[#allocation2 + $0x8] sm:$0xff]  ;;  %v44_v48 = vld [vmem:[#allocation2 + $0x18] sm:$0xff]  ;;  %v361_v57 = vpack.c.bf16 %v73_v43, %v69_v42 }
  0x32   :  { %v82_v49 = vld [vmem:[#allocation5 + $0x128] sm:$0xff]  ;;  %v111_v50 = vmul.f32 %v42_v47, %v42_v47  ;;  %187 = vmatprep.mubr.f32.mxu1 %v42_v47  ;;  %v551_v51 = vld [vmem:[#allocation2] sm:$0xff]  ;;  %v553_v52 = vld [vmem:[#allocation2 + $0x10] sm:$0xff]  ;;  %257 = vmatprep.mubr.f32.mxu0 %v44_v48  ;;  %v393_v58 = vpack.c.bf16 %v75_v45, %v71_v44  ;;  %v113_v60 = vmul.f32 %v44_v48, %v44_v48 }
  0x33   :  { %354 = vmatpush1.bf16.xpose.msra.mxu1 %v353_v26  ;;  %v80_v53 = vld [vmem:[#allocation5 + $0x118] sm:$0xff]  ;;  %v110_v55 = vmul.f32 %v551_v51, %v551_v51  ;;  %v112_v56 = vmul.f32 %v553_v52, %v553_v52  ;;  %v363_v59 = vpack.c.bf16 %v82_v49, %v78_v46  ;;  %v77_v0 = vld [vmem:[#allocation5 + $0x100] sm:$0xff]  ;;  %v79_v2 = vld [vmem:[#allocation5 + $0x110] sm:$0xff] }
  0x34   :  { %386 = vmatpush1.bf16.xpose.msra.mxu0 %v385_v27  ;;  %356 = vmatprep.subr.bf16.mxu1 %v355_v28  ;;  %v84_v54 = vld [vmem:[#allocation5 + $0x138] sm:$0xff]  ;;  %v81_v1 = vld [vmem:[#allocation5 + $0x120] sm:$0xff]  ;;  %v83_v4 = vld [vmem:[#allocation5 + $0x130] sm:$0xff] }
  0x35   :  { %388 = vmatprep.subr.bf16.mxu0 %v387_v29  ;;  %v114_v61 = vadd.f32 %v111_v50, %v110_v55  ;;  %v395_v62 = vpack.c.bf16 %v84_v54, %v80_v53  ;;  %v86_v5 = vld [vmem:[#allocation5 + $0x148] sm:$0xff]  ;;  %v88_v7 = vld [vmem:[#allocation5 + $0x158] sm:$0xff]  ;;  %v365_v9 = vpack.c.bf16 %v81_v1, %v77_v0  ;;  %v397_v10 = vpack.c.bf16 %v83_v4, %v79_v2  ;;  %v85_v13 = vld [vmem:[#allocation5 + $0x140] sm:$0xff] }
  0x36   :  { %v90_v6 = vld [vmem:[#allocation5 + $0x168] sm:$0xff]  ;;  %v92_v8 = vld [vmem:[#allocation5 + $0x178] sm:$0xff]  ;;  %v89_v14 = vld [vmem:[#allocation5 + $0x160] sm:$0xff] }
  0x37   :  { %v115_v63 = vadd.f32 %v114_v61, %v112_v56  ;;  %v367_v11 = vpack.c.bf16 %v90_v6, %v86_v5  ;;  %v399_v12 = vpack.c.bf16 %v92_v8, %v88_v7  ;;  %v87_v15 = vld [vmem:[#allocation5 + $0x150] sm:$0xff]  ;;  %v94_v17 = vld [vmem:[#allocation5 + $0x188] sm:$0xff]  ;;  %v96_v19 = vld [vmem:[#allocation5 + $0x198] sm:$0xff]  ;;  %v369_v21 = vpack.c.bf16 %v89_v14, %v85_v13 }
  0x38   :  { %v91_v16 = vld [vmem:[#allocation5 + $0x170] sm:$0xff]  ;;  %v98_v18 = vld [vmem:[#allocation5 + $0x1a8] sm:$0xff]  ;;  %v100_v20 = vld [vmem:[#allocation5 + $0x1b8] sm:$0xff] }
  0x39   :  { %v116_v3 = vadd.f32 %v115_v63, %v113_v60  ;;  %v401_v22 = vpack.c.bf16 %v91_v16, %v87_v15  ;;  %v371_v23 = vpack.c.bf16 %v98_v18, %v94_v17  ;;  %v403_v24 = vpack.c.bf16 %v100_v20, %v96_v19  ;;  %v93_v25 = vld [vmem:[#allocation5 + $0x180] sm:$0xff]  ;;  %v95_v27 = vld [vmem:[#allocation5 + $0x190] sm:$0xff]  ;;  %v102_v29 = vld [vmem:[#allocation5 + $0x1c8] sm:$0xff] }
  0x3a   :  { %v97_v26 = vld [vmem:[#allocation5 + $0x1a0] sm:$0xff]  ;;  %v99_v28 = vld [vmem:[#allocation5 + $0x1b0] sm:$0xff]  ;;  %v106_v30 = vld [vmem:[#allocation5 + $0x1e8] sm:$0xff] }
  0x3b   :  { %358 = vmatpush1.bf16.xpose.msra.mxu1 %v357_v38  ;;  %117 = vadd.xlane.f32.xlu0 %v116_v3  ;;  %v104_v31 = vld [vmem:[#allocation5 + $0x1d8] sm:$0xff]  ;;  %v373_v33 = vpack.c.bf16 %v97_v26, %v93_v25  ;;  %v405_v34 = vpack.c.bf16 %v99_v28, %v95_v27  ;;  %v375_v35 = vpack.c.bf16 %v106_v30, %v102_v29  ;;  %v101_v37 = vld [vmem:[#allocation5 + $0x1c0] sm:$0xff] }
  0x3c   :  { %390 = vmatpush1.bf16.xpose.msra.mxu0 %v389_v39  ;;  %360 = vmatprep.subr.bf16.mxu1 %v359_v40  ;;  %v108_v32 = vld [vmem:[#allocation5 + $0x1f8] sm:$0xff]  ;;  %v105_v38 = vld [vmem:[#allocation5 + $0x1e0] sm:$0xff]  ;;  %v103_v39 = vld [vmem:[#allocation5 + $0x1d0] sm:$0xff] }
  0x3d   :  { %392 = vmatprep.subr.bf16.mxu0 %v391_v41  ;;  %v407_v36 = vpack.c.bf16 %v108_v32, %v104_v31  ;;  %v107_v40 = vld [vmem:[#allocation5 + $0x1f0] sm:$0xff]  ;;  %v377_v41 = vpack.c.bf16 %v105_v38, %v101_v37  ;;  %v346_v55 = vld [vmem:[%s578_s2] ss:$0 sm:$0xff]  ;;  %s499_s2 = smov [#allocation7]  }
  0x3e   :  { %v409_v42 = vpack.c.bf16 %v107_v40, %v103_v39  ;;  %s336_s11 = sshll.u32 %s499_s2, 4  ;;  %s337_s11 = int_to_ptr.vmem [resolvable:$true] %s336_s11 }
  0x3f   :  { %s467_s12 = scalar_lea.vmem %s337_s11, 128  ;;  %p472_p3 = scmp.lt.s32.totalorder %s337_s11, %s337_s11 }
  0x40   :  { %p468_p2 = scmp.ne.s32.totalorder %s337_s11, %s467_s12  ;;  %p473_p4 = scmp.lt.s32.totalorder %s467_s12, %s467_s12 }
  0x42   :  { %p474_p5 = por %p473_p4, %p472_p3 }
  0x43   :  { %362 = vmatpush1.bf16.xpose.msra.mxu1 %v361_v57 }
  0x44   :  { %394 = vmatpush1.bf16.xpose.msra.mxu0 %v393_v58  ;;  %364 = vmatprep.subr.bf16.mxu1 %v363_v59  ;;  %p475_p6 = pnand %p474_p5, %p468_p2 }
  0x45   :  { %396 = vmatprep.subr.bf16.mxu0 %v395_v62 }
  0x4b   :  { %366 = vmatpush1.bf16.xpose.msra.mxu1 %v365_v9 }
  0x4c   :  { %398 = vmatpush1.bf16.xpose.msra.mxu0 %v397_v10  ;;  %368 = vmatprep.subr.bf16.mxu1 %v367_v11 }
  0x4d   :  { %400 = vmatprep.subr.bf16.mxu0 %v399_v12 }
  0x53   :  { %370 = vmatpush1.bf16.xpose.msra.mxu1 %v369_v21  ;;  %v310_v21 = vlaneseq }
  0x54   :  { %402 = vmatpush1.bf16.xpose.msra.mxu0 %v401_v22  ;;  %372 = vmatprep.subr.bf16.mxu1 %v371_v23 }
  0x55   :  { %404 = vmatprep.subr.bf16.mxu0 %v403_v24  ;;  %v316_v25 = vand.u32 127, %v310_v21 }
  0x57   :  { %vm318_vm4 = vcmp.lt.s32.totalorder %v316_v25, 4 }
  0x5b   :  { %374 = vmatpush1.bf16.xpose.msra.mxu1 %v373_v33  ;;  %v311_v33 = vshrl.u32 %v310_v21, 7 }
  0x5c   :  { %406 = vmatpush1.bf16.xpose.msra.mxu0 %v405_v34  ;;  %376 = vmatprep.subr.bf16.mxu1 %v375_v35 }
  0x5d   :  { %408 = vmatprep.subr.bf16.mxu0 %v407_v36  ;;  %vm327_vm5 = vcmp.eq.s32.totalorder %v311_v33, 0 }
  0x63   :  { %378 = vmatpush1.bf16.xpose.msra.mxu1 %v377_v41 }
  0x64   :  { %410 = vmatpush1.bf16.xpose.msra.mxu0 %v409_v42 }
  0x6a   :  { %188 = vmatmul.mubr.f32.vlgmr.msra.gmra.mrb[0].mxu1 %v551_v51 }
  0x6b   :  { %258 = vmatmul.mubr.f32.vlgmr.msra.gmra.mrb[0].mxu0 %v553_v52 }
  0xc8   :  { %v118_v43 = vpop.xlane.xlu0 %117 }
  0xc9   :  { %v119_v44 = vmax.f32 %v118_v43, 1e-24 }
  0xcb   :  { %417 = vrsqrt.f32 %v119_v44 }
  0xd5   :  { %v418_v45 = vpop.eup %417 }
  0xd6   :  { %v121_v46 = vmul.f32 %v418_v45, %v418_v45 }
  0xd8   :  { %v122_v50 = vmul.f32 %v121_v46, %v118_v43 }
  0xda   :  { %v270_v57 = vadd.f32 %v346_v55, %v122_v50 }
 0x13d   :  { %v189_v47 = vpop.f32.mrb[0].mxu1 }
 0x13e   :  { %v259_v48 = vpop.f32.mrb[0].mxu0  ;;  %v191_v49 = vpop.f32.mrb[1].mxu1 }
 0x13f   :  { %v260_v53 = vadd.f32 %v259_v48, %v189_v47  ;;  %v261_v54 = vpop.f32.mrb[1].mxu0 }
 0x141   :  { %v263_v56 = vmul.f32 %v418_v45, %v260_v53 }
 0x143   :  { %v271_v51 = vmul.f32 2.0, %v263_v56 }
 0x145   :  { %v272_v58 = vsub.f32 %v270_v57, %v271_v51 }
 0x147   :  { %v273_v52 = vmax.f32 %v272_v58, 0.0 }
 0x149   :  { %v274_v59 = vmin.f32 %v273_v52, 4.0 }
 0x14b   :  { %419 = vrsqrt.f32 %v274_v59  ;;  %vm277_vm0 = vcmp.eq.f32.partialorder %v274_v59, inf  ;;  %v280_v62 = vand.u32 2147483648, %v274_v59  ;;  %vm279_vm1 = vcmp.eq.f32.partialorder %v274_v59, 0.0 }
 0x155   :  { %v420_v60 = vpop.eup %419 }
 0x156   :  { %v276_v61 = vmul.f32 %v420_v60, %v274_v59 }
 0x158   :  { %v278_v63 = vsel %vm277_vm0, %v274_v59, %v276_v61 }
 0x159   :  { %v281_v0 = vsel %vm279_vm1, %v280_v62, %v278_v63 }
 0x15a   :  { %v282_v1 = vmul.f32 0.5, %v281_v0 }
 0x15c   :  { %v283_v2 = vmul.f32 -0.0012624911, %v282_v1  ;;  %v297_v3 = vsub.f32 1.0, %v282_v1 }
 0x15e   :  { %v284_v4 = vadd.f32 0.00667009, %v283_v2  ;;  %v298_v5 = vmax.f32 %v297_v3, 0.0 }
 0x160   :  { %v285_v6 = vmul.f32 %v284_v4, %v282_v1  ;;  %421 = vrsqrt.f32 %v298_v5  ;;  %vm301_vm2 = vcmp.eq.f32.partialorder %v298_v5, inf  ;;  %v304_v20 = vand.u32 2147483648, %v298_v5 }
 0x161   :  { %vm303_vm3 = vcmp.eq.f32.partialorder %v298_v5, 0.0 }
 0x162   :  { %v286_v7 = vadd.f32 -0.017088126, %v285_v6 }
 0x164   :  { %v287_v8 = vmul.f32 %v286_v7, %v282_v1 }
 0x166   :  { %v288_v9 = vadd.f32 0.03089188, %v287_v8 }
 0x168   :  { %v289_v10 = vmul.f32 %v288_v9, %v282_v1 }
 0x16a   :  { %v290_v11 = vadd.f32 -0.050174303, %v289_v10  ;;  %v422_v13 = vpop.eup %421 }
 0x16b   :  { %v300_v16 = vmul.f32 %v422_v13, %v298_v5 }
 0x16c   :  { %v291_v12 = vmul.f32 %v290_v11, %v282_v1 }
 0x16d   :  { %v302_v19 = vsel %vm301_vm2, %v298_v5, %v300_v16 }
 0x16e   :  { %v292_v14 = vadd.f32 0.08897899, %v291_v12  ;;  %v305_v23 = vsel %vm303_vm3, %v304_v20, %v302_v19 }
 0x170   :  { %v293_v15 = vmul.f32 %v292_v14, %v282_v1 }
 0x172   :  { %v294_v17 = vadd.f32 -0.2145988, %v293_v15 }
 0x174   :  { %v295_v18 = vmul.f32 %v294_v17, %v282_v1 }
 0x176   :  { %v296_v22 = vadd.f32 1.5707963, %v295_v18 }
 0x178   :  { %v306_v24 = vmul.f32 %v305_v23, %v296_v22 }
 0x17a   :  { %v307_v26 = vsub.f32 1.5707964, %v306_v24 }
 0x17c   :  { %v308_v27 = vmul.f32 2.0, %v307_v26 }
 0x17e   :  { %v309_v28 = vmul.f32 %v308_v27, %v307_v26 }
 0x180   :  { %v320_v29 = vsel %vm318_vm4, %v309_v28, 0.0 }
 0x181   :  { %v321_v30 = vrot.slane %v320_v29, 4 }
 0x183   :  { %v322_v31 = vadd.f32 %v321_v30, %v320_v29 }
 0x185   :  { %v323_v32 = vrot.slane %v322_v31, 2 }
 0x187   :  { %v324_v34 = vadd.f32 %v323_v32, %v322_v31 }
 0x189   :  { %v325_v35 = vrot.slane %v324_v34, 1 }
 0x18b   :  { %v326_v36 = vadd.f32 %v325_v35, %v324_v34 }
 0x18d   :  { %v328_v37 = vsel %vm327_vm5, %v326_v36, 0.0 }
 0x18e   :  { %329 = vst [vmem:[#allocation7] sm:$0xff] %v328_v37 }
 0x18f   :  { %478 = shalt.err (!%p475_p6)
}
 0x190   :  { %s479_s15 = scalar_lea.hbm %s579_s3, 128 }
 0x191   :  { %p480_p7 = scmp.ne.s32.totalorder %s579_s3, %s479_s15  ;;  %p483_p8 = scmp.lt.u32.totalorder %s479_s15, %s579_s3 }
 0x193   :  { %p485_p9 = pnand %p483_p8, %p480_p7 }
 0x195   :  { %488 = shalt.err (!%p485_p9)
}
 0x196   :  { %339 = dma.vmem_to_hbm [thread:$0]  %s337_s11, 128, %s579_s3, [#allocation4]  }
 0x197   :  { %493 = dma.done.wait [#allocation4], 128  }
 0x198   :  { %494 = vsyncadd [#allocation4], 4294967168 }
 0x199   :  { %343 = vsyncpa [#allocation3], 1 }
 0x19a   :  { %344 = vsyncpa [#allocation6], 1 }
 0x19b   :  { %345 = vsyncpa [#allocation4], 1 }

</bundles_post_ra>
